<compile_context>
chip_gen: v7x
topology: tpu7x:2x2x1
jax: 0.10.0
libtpu: 0.0.40
codegen_flags: <defaults>
</compile_context>

<pallas_src>
import jax
import jax.numpy as jnp
from jax.experimental import pallas as pl
from jax.experimental.pallas import tpu as pltpu


def rbfn_kernel(x_ref, sw_ref, c2_ref, beta_ref, wr_ref, b_ref, o_ref):
    c_pad = c2_ref.shape[1]
    x = x_ref[...]                                          # (TN, D) f32

    # Single MXU pass over x: columns [0:c_pad) give -2*x.c, the rest x @ Wx.
    xw = jnp.dot(x, sw_ref[...], preferred_element_type=jnp.float32)
    xc_m2 = xw[:, :c_pad]                                   # (TN, C_pad) = -2 x.c
    x_lin = xw[:, c_pad:]                                   # (TN, NOUT_PAD) = x @ Wx

    x2 = jnp.sum(x * x, axis=1, keepdims=True)              # (TN, 1)
    dist = jnp.maximum(x2 + c2_ref[...] + xc_m2, 0.0)       # (TN, C_pad), clamped >= 0
    radial = jnp.exp(-beta_ref[...] * dist)                 # (TN, C_pad)

    o_ref[...] = (x_lin
                  + jnp.dot(radial, wr_ref[...], preferred_element_type=jnp.float32)
                  + b_ref[...])                             # (TN, NOUT_PAD)


def _round_up(a, m):
    return (a + m - 1) // m * m


def _resident(shape):
    # Parameter blocks: constant index_map -> single buffer is enough.
    try:
        return pl.BlockSpec(shape, lambda i: (0, 0), pipeline_mode=pl.Buffered(1))
    except TypeError:  # older jax without pipeline_mode on BlockSpec
        return pl.BlockSpec(shape, lambda i: (0, 0))


def rbfn_forward(x, centers, beta, w, b, *, tile_n=2048):
    """x: (N, D); centers: (C, D); beta: (1, C); w: (n_out, D + C); b: (n_out,)."""
    N, D = x.shape
    C = centers.shape[0]
    n_out = w.shape[0]

    nout_pad = _round_up(n_out, 128)        # lane-dense, unmasked output stores
    c_pad = _round_up(C, 128)               # lane-dense xc / dist / radial

    # Large tile to amortize per-step overhead, but capped so the grid has
    # >= 2 steps when N permits (megacore sharding on v7x).
    tn = min(tile_n, max(8, _round_up(pl.cdiv(N, 2), 8)))
    grid_n = pl.cdiv(N, tn)                 # ragged last block handled by Pallas

    # ---- parameter preprocessing (small, one-time, outside the kernel) ----
    centers_p = jnp.pad(centers, ((0, c_pad - C), (0, 0)))          # (C_pad, D)
    beta_p = jnp.pad(beta, ((0, 0), (0, c_pad - C)))                # (1, C_pad)
    c2 = jnp.sum(centers_p * centers_p, axis=1).reshape(1, c_pad)   # (1, C_pad)

    # Torch cat order: first D columns of W act on x, remaining C on radial.
    wx = jnp.transpose(w[:, :D])                                    # (D, n_out)
    wr = jnp.transpose(w[:, D:])                                    # (C, n_out)
    wx_p = jnp.pad(wx, ((0, 0), (0, nout_pad - n_out)))             # (D, nout_pad)
    wr_p = jnp.pad(wr, ((0, c_pad - C), (0, nout_pad - n_out)))     # (C_pad, nout_pad)
    b_p = jnp.pad(b, (0, nout_pad - n_out)).reshape(1, nout_pad)    # (1, nout_pad)

    # Fused x-weight: [-2*centers^T | Wx] -> one dot yields -2*x.c and x@Wx.
    stacked = jnp.concatenate([-2.0 * jnp.transpose(centers_p), wx_p], axis=1)
    # stacked: (D, c_pad + nout_pad)

    flops = (2 * N * D * (c_pad + nout_pad)      # fused x dot
             + 2 * N * c_pad * nout_pad          # radial @ Wr
             + 6 * N * c_pad)                    # elementwise dist/radial
    bytes_accessed = 4 * (N * D + N * nout_pad                      # streamed
                          + D * (c_pad + nout_pad)                  # residents
                          + c_pad * nout_pad + 3 * c_pad + nout_pad)
    cost = pl.CostEstimate(flops=flops,
                           transcendentals=N * c_pad,
                           bytes_accessed=bytes_accessed)

    out = pl.pallas_call(
        rbfn_kernel,
        out_shape=jax.ShapeDtypeStruct((N, nout_pad), jnp.float32),
        grid=(grid_n,),
        in_specs=[
            pl.BlockSpec((tn, D), lambda i: (i, 0)),   # x: tiled over batch
            _resident((D, c_pad + nout_pad)),          # [-2*centers^T | Wx]
            _resident((1, c_pad)),                     # ||centers||^2
            _resident((1, c_pad)),                     # beta
            _resident((c_pad, nout_pad)),              # Wr
            _resident((1, nout_pad)),                  # bias
        ],
        out_specs=pl.BlockSpec((tn, nout_pad), lambda i: (i, 0)),
        compiler_params=pltpu.CompilerParams(
            dimension_semantics=("parallel",),
        ),
        cost_estimate=cost,
    )(x, stacked, c2, beta_p, wr_p, b_p)

    # TODO(synk): for huge N with tiny n_out, benchmark handing the padded
    # (N, nout_pad) buffer to the consumer directly instead of this slice.
    return out[:, :n_out]


def rbfn_reference(x, centers, beta, w, b):
    # Pure-JAX reference mirroring the torch code literally.
    diff = centers[None, :, :] - x[:, None, :]              # (N, C, D)
    dist = jnp.sum(diff * diff, axis=-1)                    # (N, C)
    radial = jnp.exp(-beta * dist)                          # (N, C)
    cat = jnp.concatenate([x, radial], axis=1)              # (N, D+C)
    return cat @ w.T + b


if __name__ == "__main__":
    N, D, C, n_out = 8, 32, 64, 10

    key = jax.random.PRNGKey(0)
    k_x, k_c, k_w = jax.random.split(key, 3)

    # Deterministic init mirroring the module:
    #   centers: provided tensor (random normal here), beta = ones(1, C),
    #   linear.weight ~ N(0, 0.02), linear.bias = 0.
    x = jax.random.normal(k_x, (N, D), dtype=jnp.float32)
    centers = jax.random.normal(k_c, (C, D), dtype=jnp.float32)
    beta = jnp.ones((1, C), dtype=jnp.float32)
    w = 0.02 * jax.random.normal(k_w, (n_out, D + C), dtype=jnp.float32)
    b = jnp.zeros((n_out,), dtype=jnp.float32)

    out = rbfn_forward(x, centers, beta, w, b)
    out = jax.block_until_ready(out)

    ref = rbfn_reference(x, centers, beta, w, b)
    assert out.shape == (N, n_out)
    assert jnp.allclose(out, ref, atol=1e-4, rtol=1e-4), "mismatch vs reference"

    print("KERNEL_OK")
</pallas_src>

<mosaic_0001>
module attributes {stable_mosaic.version = 11 : i64} {
  func.func @rbfn_kernel(%arg0: i32, %arg1: memref<8x32xf32, #tpu.memory_space<vmem>>, %arg2: memref<32x256xf32, #tpu.memory_space<vmem>>, %arg3: memref<1x128xf32, #tpu.memory_space<vmem>>, %arg4: memref<1x128xf32, #tpu.memory_space<vmem>>, %arg5: memref<128x128xf32, #tpu.memory_space<vmem>>, %arg6: memref<1x128xf32, #tpu.memory_space<vmem>>, %arg7: memref<8x128xf32, #tpu.memory_space<vmem>>) attributes {dimension_semantics = [#tpu.dimension_semantics<parallel>], iteration_bounds = array<i64: 1>, scalar_prefetch = 0 : i64, scratch_operands = 0 : i64, tpu.core_type = #tpu.core_type<tc>, window_params = [{transform_indices = @transform_0, window_bounds = array<i64: 8, 32>}, {pipeline_mode = #tpu.pipeline_mode<synchronous>, transform_indices = @transform_1, window_bounds = array<i64: 32, 256>}, {pipeline_mode = #tpu.pipeline_mode<synchronous>, transform_indices = @transform_2, window_bounds = array<i64: 1, 128>}, {pipeline_mode = #tpu.pipeline_mode<synchronous>, transform_indices = @transform_3, window_bounds = array<i64: 1, 128>}, {pipeline_mode = #tpu.pipeline_mode<synchronous>, transform_indices = @transform_4, window_bounds = array<i64: 128, 128>}, {pipeline_mode = #tpu.pipeline_mode<synchronous>, transform_indices = @transform_5, window_bounds = array<i64: 1, 128>}, {transform_indices = @transform_6, window_bounds = array<i64: 8, 128>}]} {
    %c0 = arith.constant 0 : index
    %c0_0 = arith.constant 0 : index
    %0 = vector.load %arg1[%c0, %c0_0] : memref<8x32xf32, #tpu.memory_space<vmem>>, vector<8x32xf32>
    %c0_1 = arith.constant 0 : index
    %c0_2 = arith.constant 0 : index
    %1 = vector.load %arg2[%c0_1, %c0_2] : memref<32x256xf32, #tpu.memory_space<vmem>>, vector<32x256xf32>
    %cst = arith.constant dense<0.000000e+00> : vector<8x256xf32>
    %2 = tpu.matmul %0, %1, %cst {dimension_numbers = #tpu.dot_dimension_numbers<[1], [0], [0], [1], [0, 0, 1, 1], [], []>} : vector<8x32xf32>, vector<32x256xf32>, vector<8x256xf32> -> vector<8x256xf32>
    %3 = vector.extract_strided_slice %2 {offsets = [0, 0], sizes = [8, 128], strides = [1, 1]} : vector<8x256xf32> to vector<8x128xf32>
    %4 = vector.extract_strided_slice %2 {offsets = [0, 128], sizes = [8, 128], strides = [1, 1]} : vector<8x256xf32> to vector<8x128xf32>
    %5 = arith.mulf %0, %0 : vector<8x32xf32>
    %cst_3 = arith.constant dense<0.000000e+00> : vector<8xf32>
    %6 = vector.multi_reduction <add>, %5, %cst_3 [1] : vector<8x32xf32> to vector<8xf32>
    %7 = vector.shape_cast %6 : vector<8xf32> to vector<8x1xf32>
    %c0_4 = arith.constant 0 : index
    %c0_5 = arith.constant 0 : index
    %8 = vector.load %arg3[%c0_4, %c0_5] : memref<1x128xf32, #tpu.memory_space<vmem>>, vector<1x128xf32>
    %9 = vector.broadcast %7 : vector<8x1xf32> to vector<8x128xf32>
    %10 = vector.broadcast %8 : vector<1x128xf32> to vector<8x128xf32>
    %11 = arith.addf %9, %10 : vector<8x128xf32>
    %12 = arith.addf %11, %3 : vector<8x128xf32>
    %cst_6 = arith.constant 0.000000e+00 : f32
    %13 = vector.broadcast %cst_6 : f32 to vector<8x128xf32>
    %14 = arith.maximumf %12, %13 : vector<8x128xf32>
    %c0_7 = arith.constant 0 : index
    %c0_8 = arith.constant 0 : index
    %15 = vector.load %arg4[%c0_7, %c0_8] : memref<1x128xf32, #tpu.memory_space<vmem>>, vector<1x128xf32>
    %cst_9 = arith.constant 0.000000e+00 : f32
    %16 = vector.broadcast %cst_9 : f32 to vector<1x128xf32>
    %17 = arith.subf %16, %15 : vector<1x128xf32>
    %18 = vector.broadcast %17 : vector<1x128xf32> to vector<8x128xf32>
    %19 = arith.mulf %18, %14 : vector<8x128xf32>
    %20 = math.exp %19 : vector<8x128xf32>
    %c0_10 = arith.constant 0 : index
    %c0_11 = arith.constant 0 : index
    %21 = vector.load %arg5[%c0_10, %c0_11] : memref<128x128xf32, #tpu.memory_space<vmem>>, vector<128x128xf32>
    %cst_12 = arith.constant dense<0.000000e+00> : vector<8x128xf32>
    %22 = tpu.matmul %20, %21, %cst_12 {dimension_numbers = #tpu.dot_dimension_numbers<[1], [0], [0], [1], [0, 0, 1, 1], [], []>} : vector<8x128xf32>, vector<128x128xf32>, vector<8x128xf32> -> vector<8x128xf32>
    %23 = arith.addf %4, %22 : vector<8x128xf32>
    %c0_13 = arith.constant 0 : index
    %c0_14 = arith.constant 0 : index
    %24 = vector.load %arg6[%c0_13, %c0_14] : memref<1x128xf32, #tpu.memory_space<vmem>>, vector<1x128xf32>
    %25 = vector.broadcast %24 : vector<1x128xf32> to vector<8x128xf32>
    %26 = arith.addf %23, %25 : vector<8x128xf32>
    %c0_15 = arith.constant 0 : index
    %c0_16 = arith.constant 0 : index
    %27 = vector.load %arg7[%c0_15, %c0_16] : memref<8x128xf32, #tpu.memory_space<vmem>>, vector<8x128xf32>
    tpu.vector_store %arg7[%c0_15, %c0_16], %26 {strides = array<i32>} : memref<8x128xf32, #tpu.memory_space<vmem>>, vector<8x128xf32>,
    return
  }
  func.func @transform_0(%arg0: i32) -> (i32, i32) {
    %c0_i32 = arith.constant 0 : i32
    %c0_i32_0 = arith.constant 0 : i32
    return %arg0, %c0_i32 : i32, i32
  }
  func.func @transform_1(%arg0: i32) -> (i32, i32) {
    %c0_i32 = arith.constant 0 : i32
    %c0_i32_0 = arith.constant 0 : i32
    %c0_i32_1 = arith.constant 0 : i32
    return %c0_i32, %c0_i32_0 : i32, i32
  }
  func.func @transform_2(%arg0: i32) -> (i32, i32) {
    %c0_i32 = arith.constant 0 : i32
    %c0_i32_0 = arith.constant 0 : i32
    %c0_i32_1 = arith.constant 0 : i32
    return %c0_i32, %c0_i32_0 : i32, i32
  }
  func.func @transform_3(%arg0: i32) -> (i32, i32) {
    %c0_i32 = arith.constant 0 : i32
    %c0_i32_0 = arith.constant 0 : i32
    %c0_i32_1 = arith.constant 0 : i32
    return %c0_i32, %c0_i32_0 : i32, i32
  }
  func.func @transform_4(%arg0: i32) -> (i32, i32) {
    %c0_i32 = arith.constant 0 : i32
    %c0_i32_0 = arith.constant 0 : i32
    %c0_i32_1 = arith.constant 0 : i32
    return %c0_i32, %c0_i32_0 : i32, i32
  }
  func.func @transform_5(%arg0: i32) -> (i32, i32) {
    %c0_i32 = arith.constant 0 : i32
    %c0_i32_0 = arith.constant 0 : i32
    %c0_i32_1 = arith.constant 0 : i32
    return %c0_i32, %c0_i32_0 : i32, i32
  }
  func.func @transform_6(%arg0: i32) -> (i32, i32) {
    %c0_i32 = arith.constant 0 : i32
    %c0_i32_0 = arith.constant 0 : i32
    return %arg0, %c0_i32 : i32, i32
  }
}

</mosaic_0001>

<bundles_post_ra>
// kernel: tpu_custom_call.1
= control target key start
LH: loop header
LB: loop body
LE: loop exit
PB: predicated region body
PF: predicated region fallthrough
CT: control target
= control target key end

     0   :  { %11 = vsyncpa [#allocation3], 0  ;;  %s589_s0 = inlined_call_operand.hbm [shape: f32[8,32], index: 0, kind: input, shape index: {}]   ;;  %s590_s1 = inlined_call_operand.hbm [shape: f32[32,256], index: 1, kind: input, shape index: {}]   ;;  %s591_s2 = inlined_call_operand.vmem [shape: f32[1,128], index: 2, kind: input, shape index: {}]   ;;  %s592_s3 = inlined_call_operand.vmem [shape: f32[1,128], index: 3, kind: input, shape index: {}]   ;;  %s593_s4 = inlined_call_operand.hbm [shape: f32[128,128], index: 4, kind: input, shape index: {}]   ;;  %s594_s5 = inlined_call_operand.vmem [shape: f32[1,128], index: 5, kind: input, shape index: {}]   ;;  %s595_s6 = inlined_call_operand.hbm [shape: f32[8,128], index: 6, kind: output, shape index: {}]  }
   0x1   :  { %12 = vsyncpa [#allocation6], 0 }
   0x2   :  { %13 = vsyncpa [#allocation4], 0  ;;  %s478_s21 = smov [#allocation5]   ;;  %s384_s25 = scalar_lea.hbm %s590_s1, 1024 }
   0x3   :  { %s29_s22 = sshll.u32 %s478_s21, 4  ;;  %p385_p0 = scmp.ne.s32.totalorder %s590_s1, %s384_s25  ;;  %s30_s22 = int_to_ptr.vmem [resolvable:$true] %s29_s22 }
   0x4   :  { %p388_p1 = scmp.lt.u32.totalorder %s384_s25, %s590_s1 }
   0x6   :  { %p390_p2 = pnand %p388_p1, %p385_p0 }
   0x8   :  { %393 = shalt.err (!%p390_p2)
}
   0x9   :  { %s394_s30 = scalar_lea.vmem %s30_s22, 1024  ;;  %p399_p4 = scmp.lt.s32.totalorder %s30_s22, %s30_s22 }
   0xa   :  { %p395_p3 = scmp.ne.s32.totalorder %s30_s22, %s394_s30  ;;  %p400_p5 = scmp.lt.s32.totalorder %s394_s30, %s394_s30 }
   0xc   :  { %p401_p6 = por %p400_p5, %p399_p4 }
   0xe   :  { %p402_p7 = pnand %p401_p6, %p395_p3 }
  0x10   :  { %405 = shalt.err (!%p402_p7)
}
  0x11   :  { %s479_s7 = smov 256   ;;  %s480_s8 = smov 16  }
  0x12   :  { %35 = dma.hbm_to_vmem [thread:$0]  %s590_s1, 1024, %s30_s22, [#allocation6], %s479_s7, %s479_s7, %s480_s8  }
  0x13   :  { %s481_s11 = smov [#allocation2]   ;;  %s482_s13 = smov [#allocation7]  }
  0x14   :  { %s20_s12 = sshll.u32 %s481_s11, 4  ;;  %s45_s14 = sshll.u32 %s482_s13, 4  ;;  %s21_s12 = int_to_ptr.vmem [resolvable:$true] %s20_s12  ;;  %s46_s14 = int_to_ptr.vmem [resolvable:$true] %s45_s14 }
  0x15   :  { %s406_s17 = scalar_lea.hbm %s589_s0, 128 }
  0x16   :  { %p407_p8 = scmp.ne.s32.totalorder %s589_s0, %s406_s17  ;;  %p410_p9 = scmp.lt.u32.totalorder %s406_s17, %s589_s0 }
  0x18   :  { %p412_p10 = pnand %p410_p9, %p407_p8 }
  0x1a   :  { %415 = shalt.err (!%p412_p10)
}
  0x1b   :  { %s416_s1 = scalar_lea.vmem %s21_s12, 128  ;;  %p421_p12 = scmp.lt.s32.totalorder %s21_s12, %s21_s12 }
  0x1c   :  { %p417_p11 = scmp.ne.s32.totalorder %s21_s12, %s416_s1  ;;  %p422_p13 = scmp.lt.s32.totalorder %s416_s1, %s416_s1 }
  0x1e   :  { %p423_p0 = por %p422_p13, %p421_p12 }
  0x20   :  { %p424_p1 = pnand %p423_p0, %p417_p11 }
  0x22   :  { %427 = shalt.err (!%p424_p1)
}
  0x23   :  { %23 = dma.hbm_to_vmem [thread:$0]  %s589_s0, 128, %s21_s12, [#allocation3]  }
  0x24   :  { %s428_s26 = scalar_lea.hbm %s593_s4, 2048 }
  0x25   :  { %p429_p2 = scmp.ne.s32.totalorder %s593_s4, %s428_s26  ;;  %p432_p3 = scmp.lt.u32.totalorder %s428_s26, %s593_s4 }
  0x27   :  { %p434_p4 = pnand %p432_p3, %p429_p2 }
  0x29   :  { %437 = shalt.err (!%p434_p4)
}
  0x2a   :  { %s438_s7 = scalar_lea.vmem %s46_s14, 2048  ;;  %p443_p6 = scmp.lt.s32.totalorder %s46_s14, %s46_s14 }
  0x2b   :  { %p439_p5 = scmp.ne.s32.totalorder %s46_s14, %s438_s7  ;;  %p444_p7 = scmp.lt.s32.totalorder %s438_s7, %s438_s7 }
  0x2d   :  { %p445_p8 = por %p444_p7, %p443_p6 }
  0x2f   :  { %p446_p9 = pnand %p445_p8, %p439_p5 }
  0x31   :  { %449 = shalt.err (!%p446_p9)
}
  0x32   :  { %s483_s0 = smov 128   ;;  %s484_s8 = smov 8  }
  0x33   :  { %51 = dma.hbm_to_vmem [thread:$0]  %s593_s4, 2048, %s46_s14, [#allocation6], %s483_s0, %s483_s0, %s484_s8  }
  0x34   :  { %472 = dma.done.wait [#allocation3], 128  }
  0x35   :  { %473 = vsyncadd [#allocation3], 4294967168 }
  0x36   :  { %474 = dma.done.wait [#allocation6], 3072  }
  0x37   :  { %475 = vsyncadd [#allocation6], 4294964224  ;;  %v485_v0 = vmov 0.0   ;;  %v486_v1 = vmov 0.0|0.0   ;;  %v65_v2 = vld [vmem:[#allocation5 + $0x8] sm:$0xff]  ;;  %v67_v3 = vld [vmem:[#allocation5 + $0x18] sm:$0xff]  ;;  %v164_v41 = vlaneseq }
  0x38   :  { %140 = vmatprep.mubr.f32.mxu0 %v485_v0  ;;  %347 = vmatprep.subr.bf16.mxu1 %v486_v1  ;;  %v64_v4 = vld [vmem:[#allocation5] sm:$0xff]  ;;  %v339_v5 = vpack.c.bf16 %v67_v3, %v65_v2  ;;  %v66_v6 = vld [vmem:[#allocation5 + $0x10] sm:$0xff]  ;;  %v69_v7 = vld [vmem:[#allocation5 + $0x28] sm:$0xff]  ;;  %vm72_vm0 = vcmask 261120   ;;  %vm487_vm1 = vmmov 0   ;;  %s488_s15 = smov [#allocation8]  }
  0x39   :  { %v71_v8 = vld [vmem:[#allocation5 + $0x38] sm:$0xff]  ;;  %v341_v9 = vpack.c.bf16 %v66_v6, %v64_v4  ;;  %v68_v11 = vld [vmem:[#allocation5 + $0x20] sm:$0xff]  ;;  %v70_v12 = vld [vmem:[#allocation5 + $0x30] sm:$0xff]  ;;  %336 = vmatprep.mubr.msk.f32.mxu1 %vm487_vm1, %v485_v0  ;;  %v165_v42 = vshrl.u32 %v164_v41, 7 }
  0x3a   :  { %v343_v10 = vpack.c.bf16 %v71_v8, %v69_v7  ;;  %v63_v13 = vld [vmem:[#allocation2] sm:$0xff]  ;;  %340 = vmatprep.subr.bf16.mxu0 %v339_v5  ;;  %v172_v15 = vld [vmem:[#allocation7] sm:$0xff]  ;;  %v173_v16 = vld [vmem:[#allocation7 + $0x8] sm:$0xff]  ;;  %v345_v18 = vpack.c.bf16 %v70_v12, %v68_v11 }
  0x3b   :  { %v147_v14 = vmul.f32 %v63_v13, %v63_v13  ;;  %v174_v17 = vld [vmem:[#allocation7 + $0x10] sm:$0xff]  ;;  %342 = vmatpush1.bf16.msra.mxu0 %v341_v9  ;;  %v348_v19 = vpack.c.bf16 %v173_v16, %v172_v15  ;;  %v175_v20 = vld [vmem:[#allocation7 + $0x18] sm:$0xff]  ;;  %v176_v23 = vld [vmem:[#allocation7 + $0x20] sm:$0xff]  ;;  %v166_v48 = vsub.s32 0, %v165_v42 }
  0x3c   :  { %344 = vmatprep.subr.bf16.mxu0 %v343_v10  ;;  %v351_v22 = vpack.c.bf16 %v175_v20, %v174_v17  ;;  %v177_v24 = vld [vmem:[#allocation7 + $0x28] sm:$0xff]  ;;  %v178_v26 = vld [vmem:[#allocation7 + $0x30] sm:$0xff]  ;;  %v179_v27 = vld [vmem:[#allocation7 + $0x38] sm:$0xff] }
  0x3d   :  { %v148_v21 = vsel %vm72_vm0, %v147_v14, 0.0  ;;  %349 = vmatpush3.bf16.msra.mxu1 %v348_v19  ;;  %v354_v25 = vpack.c.bf16 %v177_v24, %v176_v23  ;;  %v357_v28 = vpack.c.bf16 %v179_v27, %v178_v26  ;;  %v180_v29 = vld [vmem:[#allocation7 + $0x40] sm:$0xff]  ;;  %v181_v30 = vld [vmem:[#allocation7 + $0x48] sm:$0xff]  ;;  %v182_v32 = vld [vmem:[#allocation7 + $0x50] sm:$0xff] }
  0x3e   :  { %149 = vadd.xlane.f32.xlu0 %v148_v21  ;;  %350 = vmatprep.subr.bf16.mxu1 %v486_v1  ;;  %v360_v31 = vpack.c.bf16 %v181_v30, %v180_v29  ;;  %v183_v33 = vld [vmem:[#allocation7 + $0x58] sm:$0xff]  ;;  %v184_v35 = vld [vmem:[#allocation7 + $0x60] sm:$0xff]  ;;  %v185_v36 = vld [vmem:[#allocation7 + $0x68] sm:$0xff] }
  0x3f   :  { %346 = vmatpush1.bf16.msra.mxu0 %v345_v18  ;;  %v363_v34 = vpack.c.bf16 %v183_v33, %v182_v32  ;;  %v366_v37 = vpack.c.bf16 %v185_v36, %v184_v35  ;;  %v186_v38 = vld [vmem:[#allocation7 + $0x70] sm:$0xff]  ;;  %v187_v39 = vld [vmem:[#allocation7 + $0x78] sm:$0xff] }
  0x40   :  { %v369_v40 = vpack.c.bf16 %v187_v39, %v186_v38  ;;  %v285_v44 = vld [vmem:[%s591_s2] ss:$0 sm:$0xff] }
  0x41   :  { %352 = vmatpush3.bf16.msra.mxu1 %v351_v22  ;;  %v161_v45 = vld [vmem:[%s592_s3] sm:$0x1]  ;;  %s274_s3 = sshll.u32 %s488_s15, 4  ;;  %s275_s3 = int_to_ptr.vmem [resolvable:$true] %s274_s3 }
  0x42   :  { %284 = vmatmul.mubr.msk.f32.vlgmr.msra.gmra.mrb[0].mxu0 %vm72_vm0, %v63_v13  ;;  %353 = vmatprep.subr.bf16.mxu1 %v486_v1  ;;  %v162_v47 = vsub.f32 0.0, %v161_v45  ;;  %v286_v58 = vld [vmem:[%s594_s5] ss:$0 sm:$0xff]  ;;  %s450_s16 = scalar_lea.vmem %s275_s3, 128  ;;  %p455_p11 = scmp.lt.s32.totalorder %s275_s3, %s275_s3 }
  0x43   :  { %p451_p10 = scmp.ne.s32.totalorder %s275_s3, %s450_s16  ;;  %p456_p12 = scmp.lt.s32.totalorder %s450_s16, %s450_s16 }
  0x44   :  { %v167_v51 = vrot.slane %v162_v47, %v166_v48 }
  0x45   :  { %355 = vmatpush3.bf16.msra.mxu1 %v354_v25  ;;  %p457_p13 = por %p456_p12, %p455_p11 }
  0x46   :  { %356 = vmatprep.subr.bf16.mxu1 %v486_v1 }
  0x47   :  { %p458_p0 = pnand %p457_p13, %p451_p10 }
  0x49   :  { %358 = vmatpush3.bf16.msra.mxu1 %v357_v28 }
  0x4a   :  { %359 = vmatprep.subr.bf16.mxu1 %v486_v1 }
  0x4d   :  { %361 = vmatpush3.bf16.msra.mxu1 %v360_v31 }
  0x4e   :  { %362 = vmatprep.subr.bf16.mxu1 %v486_v1 }
  0x51   :  { %364 = vmatpush3.bf16.msra.mxu1 %v363_v34 }
  0x52   :  { %365 = vmatprep.subr.bf16.mxu1 %v486_v1 }
  0x55   :  { %367 = vmatpush3.bf16.msra.mxu1 %v366_v37 }
  0x56   :  { %368 = vmatprep.subr.bf16.mxu1 %v486_v1 }
  0x59   :  { %370 = vmatpush3.bf16.msra.mxu1 %v369_v40 }
  0xcb   :  { %v150_v43 = vpop.xlane.xlu0 %149 }
  0xcc   :  { %v158_v46 = vadd.f32 %v285_v44, %v150_v43 }
 0x115   :  { %v142_v49 = vpop.f32.mrb[0].mxu0 }
 0x116   :  { %v159_v50 = vadd.f32 %v158_v46, %v142_v49  ;;  %v144_v52 = vpop.f32.mrb[1].mxu0 }
 0x118   :  { %v160_v53 = vmax.f32 %v159_v50, 0.0 }
 0x11a   :  { %v169_v54 = vmul.f32 %v167_v51, %v160_v53 }
 0x11c   :  { %v170_v55 = vmul.f32 1.442695, %v169_v54 }
 0x11e   :  { %382 = vpow2.f32 %v170_v55 }
 0x128   :  { %v383_v56 = vpop.eup %382 }
 0x129   :  { %337 = vmatmul.mubr.f32.vlgmr.msra.gmra.mrb[0].mxu1 %v383_v56 }
 0x1fc   :  { %v254_v57 = vpop.f32.mrb[0].mxu1 }
 0x1fd   :  { %v258_v59 = vadd.f32 %v254_v57, %v144_v52  ;;  %v338_v60 = vpop.f32.mrb[1].mxu1 }
 0x1ff   :  { %v266_v61 = vadd.f32 %v286_v58, %v258_v59 }
 0x201   :  { %267 = vst [vmem:[#allocation8] sm:$0xff] %v266_v61 }
 0x202   :  { %461 = shalt.err (!%p458_p0)
}
 0x203   :  { %s462_s19 = scalar_lea.hbm %s595_s6, 128 }
 0x204   :  { %p463_p1 = scmp.ne.s32.totalorder %s595_s6, %s462_s19  ;;  %p466_p2 = scmp.lt.u32.totalorder %s462_s19, %s595_s6 }
 0x206   :  { %p468_p3 = pnand %p466_p2, %p463_p1 }
 0x208   :  { %471 = shalt.err (!%p468_p3)
}
 0x209   :  { %277 = dma.vmem_to_hbm [thread:$0]  %s275_s3, 128, %s595_s6, [#allocation4]  }
 0x20a   :  { %476 = dma.done.wait [#allocation4], 128  }
 0x20b   :  { %477 = vsyncadd [#allocation4], 4294967168 }
 0x20c   :  { %281 = vsyncpa [#allocation3], 1 }
 0x20d   :  { %282 = vsyncpa [#allocation6], 1 }
 0x20e   :  { %283 = vsyncpa [#allocation4], 1 }

</bundles_post_ra>
